<compile_context>
chip_gen: v7x
topology: tpu7x:2x2x1
jax: 0.10.0
libtpu: 0.0.40
codegen_flags: <defaults>
</compile_context>

<pallas_src>
import functools

import jax
import jax.numpy as jnp
from jax.experimental import pallas as pl
from jax.experimental.pallas import tpu as pltpu


def _w8a16_kernel(x_ref, w_ref, scales_ref, bias_ref, o_ref, acc_ref, *, split_f32):
    k = pl.program_id(2)

    @pl.when(k == 0)
    def _():
        acc_ref[...] = jnp.zeros_like(acc_ref)

    # int8 -> bf16 dequant in the hot path (exact: |w| <= 128 is representable).
    w = w_ref[...].astype(jnp.bfloat16)                       # (tk, tn)

    if split_f32:
        # fp32 activations: 2-pass bf16 split keeps ~fp32 accuracy on the bf16 MXU.
        x = x_ref[...]                                        # (tm, tk) f32
        x_hi = x.astype(jnp.bfloat16)
        x_lo = (x - x_hi.astype(jnp.float32)).astype(jnp.bfloat16)
        acc_ref[...] += (
            jnp.dot(x_hi, w, preferred_element_type=jnp.float32)
            + jnp.dot(x_lo, w, preferred_element_type=jnp.float32))
    else:
        x = x_ref[...].astype(jnp.bfloat16)                   # (tm, tk) bf16 fast path
        acc_ref[...] += jnp.dot(x, w, preferred_element_type=jnp.float32)

    @pl.when(k == pl.num_programs(2) - 1)
    def _():
        out = acc_ref[...] * scales_ref[...] + bias_ref[...]
        o_ref[...] = out.astype(o_ref.dtype)


def _round_up(a, b):
    return ((a + b - 1) // b) * b


def _pick_tile(dim, align, max_tile, min_tiles=1):
    """Tile size (multiple of `align`, <= ~max_tile) with padding < 1 tile."""
    d = _round_up(dim, align)
    n = max(min_tiles, pl.cdiv(d, max_tile))
    t = _round_up(pl.cdiv(d, n), align)
    return t, n * t


def prepare_w8a16(int8_weights, scales, bias=None, *, max_tn=1024, max_tk=2048):
    """One-time weight prep (run OUTSIDE the jitted forward).

    Pads to tile multiples, relayouts the int8 weight to (K, N) so the kernel is a
    plain (tm,tk)x(tk,tn) MXU matmul with no per-tile transpose, and pre-pads
    scales/bias.  Returns (params, meta): params = dict of device arrays, meta =
    dict of static ints (bake into the forward via functools.partial).
    """
    N, K = int8_weights.shape
    d_n = _round_up(N, 128)
    # Keep >=2 N-blocks when N is big enough so both v7x TensorCores get work
    # even when M fits in one block (decode).
    tn, Np = _pick_tile(N, 128, max_tn, min_tiles=2 if d_n >= 512 else 1)
    tk, Kp = _pick_tile(K, 128, max_tk)

    w = jnp.asarray(int8_weights, jnp.int8)
    if (Np, Kp) != (N, K):
        w = jnp.pad(w, ((0, Np - N), (0, Kp - K)))
    w_kn = jnp.transpose(w)                                   # (Kp, Np) int8, one-time

    scales2d = jnp.asarray(scales, jnp.float32).reshape(1, N)
    if bias is None:
        bias2d = jnp.zeros((1, N), jnp.float32)
    else:
        bias2d = jnp.asarray(bias, jnp.float32).reshape(1, N)
    if Np != N:
        scales2d = jnp.pad(scales2d, ((0, 0), (0, Np - N)))
        bias2d = jnp.pad(bias2d, ((0, 0), (0, Np - N)))

    params = {"w_kn": w_kn, "scales": scales2d, "bias": bias2d}
    meta = {"N": N, "K": K, "Np": Np, "Kp": Kp, "tn": tn, "tk": tk}
    return params, meta


def w8a16_linear(x, params, *, meta, max_tm=512, compute_dtype=None):
    """out = (x @ W_int8.astype(x.dtype).T) * scales + bias; x: (..., K)."""
    N, K, Np, Kp, tn, tk = (meta[n] for n in ("N", "K", "Np", "Kp", "tn", "tk"))
    *lead, Kx = x.shape
    assert Kx == K, (Kx, K)
    out_dtype = x.dtype
    if compute_dtype is not None:
        x = x.astype(compute_dtype)

    x2d = x.reshape(-1, K)
    M = x2d.shape[0]
    split_f32 = x2d.dtype == jnp.float32

    tm_align = 16 if x2d.dtype == jnp.bfloat16 else 8
    tm, Mp = _pick_tile(M, tm_align, max_tm)
    if (Mp, Kp) != (M, K):
        x2d = jnp.pad(x2d, ((0, Mp - M), (0, Kp - K)))        # per-call pad: x only

    grid = (Mp // tm, Np // tn, Kp // tk)

    # VMEM budget: double-buffered operands + output, plus the f32 accumulator.
    # Capped at 48 MiB -> safe on v7x (64 MiB/TC), plenty on v5e/v6e (128 MiB).
    x_b = tm * tk * x2d.dtype.itemsize
    w_b = tk * tn                                             # int8
    sb_b = 2 * tn * 4                                         # scales + bias blocks
    o_b = tm * tn * jnp.dtype(out_dtype).itemsize
    acc_b = tm * tn * 4
    footprint = 2 * (x_b + w_b + sb_b + o_b) + acc_b
    vmem_limit = int(min(max(2 * footprint, 32 << 20), 48 << 20))

    cost = pl.CostEstimate(
        flops=2 * Mp * Np * Kp * (2 if split_f32 else 1),
        transcendentals=0,
        bytes_accessed=(Mp * Kp * x2d.dtype.itemsize + Kp * Np
                        + Mp * Np * jnp.dtype(out_dtype).itemsize + 2 * Np * 4),
    )

    out = pl.pallas_call(
        functools.partial(_w8a16_kernel, split_f32=split_f32),
        out_shape=jax.ShapeDtypeStruct((Mp, Np), out_dtype),
        grid_spec=pltpu.PrefetchScalarGridSpec(
            num_scalar_prefetch=0,
            grid=grid,
            in_specs=[
                pl.BlockSpec((tm, tk), lambda i, j, k: (i, k)),   # activations (M, K)
                pl.BlockSpec((tk, tn), lambda i, j, k: (k, j)),   # int8 weights (K, N)
                pl.BlockSpec((1, tn), lambda i, j, k: (0, j)),    # scales (k-resident)
                pl.BlockSpec((1, tn), lambda i, j, k: (0, j)),    # bias   (k-resident)
            ],
            out_specs=pl.BlockSpec((tm, tn), lambda i, j, k: (i, j)),
            scratch_shapes=[pltpu.VMEM((tm, tn), jnp.float32)],
        ),
        compiler_params=pltpu.CompilerParams(
            dimension_semantics=("parallel", "parallel", "arbitrary"),
            vmem_limit_bytes=vmem_limit,
        ),
        cost_estimate=cost,
    )(x2d, params["w_kn"], params["scales"], params["bias"])

    return out[:M, :N].reshape(*lead, N).astype(out_dtype)


if __name__ == "__main__":
    key = jax.random.PRNGKey(0)
    k_w, k_s, k_b, k_x = jax.random.split(key, 4)

    in_features = 32
    out_features = 64
    batch, seq = 2, 8

    # Deterministic synthetic parameters (mirrors W8A16LinearLayer.__init__).
    int8_weights = jax.random.randint(
        k_w, (out_features, in_features), minval=-128, maxval=127, dtype=jnp.int8)
    scales = jax.random.normal(k_s, (out_features,), dtype=jnp.float32)
    bias = jax.random.normal(k_b, (1, out_features), dtype=jnp.float32)
    x = jax.random.normal(k_x, (batch, seq, in_features), dtype=jnp.float32)

    # One-time prep (pad + (K,N) relayout) outside the jitted forward.
    params, meta = prepare_w8a16(int8_weights, scales, bias)
    fwd = jax.jit(functools.partial(w8a16_linear, meta=meta))

    out = jax.block_until_ready(fwd(x, params))
    assert out.shape == (batch, seq, out_features)
    assert out.dtype == x.dtype

    # Full-precision PyTorch-style reference (weights cast to x.dtype == fp32).
    ref_f32 = ((x.reshape(-1, in_features) @ int8_weights.astype(jnp.float32).T)
               * scales + bias).reshape(batch, seq, out_features)
    assert jnp.allclose(out, ref_f32, rtol=5e-3, atol=0.5), \
        float(jnp.max(jnp.abs(out - ref_f32)))

    # Fast inference path: bf16 activations (single MXU pass), checked against a
    # reference with matching numerics (bf16 operands, f32 accumulation).
    fwd_bf16 = jax.jit(functools.partial(w8a16_linear, meta=meta,
                                         compute_dtype=jnp.bfloat16))
    out_bf16 = jax.block_until_ready(fwd_bf16(x, params))
    ref_bf16 = (jnp.einsum(
        "mk,nk->mn",
        x.reshape(-1, in_features).astype(jnp.bfloat16),
        int8_weights.astype(jnp.bfloat16),
        preferred_element_type=jnp.float32) * scales + bias
    ).reshape(batch, seq, out_features)
    assert jnp.allclose(out_bf16.astype(jnp.float32), ref_bf16, rtol=1e-2, atol=0.1), \
        float(jnp.max(jnp.abs(out_bf16.astype(jnp.float32) - ref_bf16)))

    print("KERNEL_OK")
</pallas_src>

<mosaic_0001>
module attributes {stable_mosaic.version = 11 : i64} {
  func.func @_w8a16_kernel(%arg0: i32, %arg1: i32, %arg2: i32, %arg3: memref<16x128xf32, #tpu.memory_space<vmem>>, %arg4: memref<128x128xi8, #tpu.memory_space<vmem>>, %arg5: memref<1x128xf32, #tpu.memory_space<vmem>>, %arg6: memref<1x128xf32, #tpu.memory_space<vmem>>, %arg7: memref<16x128xf32, #tpu.memory_space<vmem>>, %arg8: memref<16x128xf32, #tpu.memory_space<vmem>>) attributes {dimension_semantics = [#tpu.dimension_semantics<parallel>, #tpu.dimension_semantics<parallel>, #tpu.dimension_semantics<arbitrary>], iteration_bounds = array<i64: 1, 1, 1>, scalar_prefetch = 0 : i64, scratch_operands = 1 : i64, tpu.core_type = #tpu.core_type<tc>, window_params = [{transform_indices = @transform_0, window_bounds = array<i64: 16, 128>}, {transform_indices = @transform_1, window_bounds = array<i64: 128, 128>}, {transform_indices = @transform_2, window_bounds = array<i64: 1, 128>}, {transform_indices = @transform_3, window_bounds = array<i64: 1, 128>}, {transform_indices = @transform_4, window_bounds = array<i64: 16, 128>}]} {
    %c0_i32 = arith.constant 0 : i32
    %0 = arith.cmpi eq, %arg2, %c0_i32 : i32
    %1 = arith.extui %0 : i1 to i32
    %c0_i32_0 = arith.constant 0 : i32
    %2 = arith.cmpi ne, %1, %c0_i32_0 : i32
    scf.if %2 {
      %cst_11 = arith.constant 0.000000e+00 : f32
      %19 = vector.broadcast %cst_11 : f32 to vector<16x128xf32>
      %c0_12 = arith.constant 0 : index
      %c0_13 = arith.constant 0 : index
      %20 = vector.load %arg8[%c0_12, %c0_13] : memref<16x128xf32, #tpu.memory_space<vmem>>, vector<16x128xf32>
      tpu.vector_store %arg8[%c0_12, %c0_13], %19 {strides = array<i32>} : memref<16x128xf32, #tpu.memory_space<vmem>>, vector<16x128xf32>,
    } else {
    }
    %c0 = arith.constant 0 : index
    %c0_1 = arith.constant 0 : index
    %3 = vector.load %arg4[%c0, %c0_1] : memref<128x128xi8, #tpu.memory_space<vmem>>, vector<128x128xi8>
    %4 = arith.sitofp %3 : vector<128x128xi8> to vector<128x128xbf16>
    %c0_2 = arith.constant 0 : index
    %c0_3 = arith.constant 0 : index
    %5 = vector.load %arg3[%c0_2, %c0_3] : memref<16x128xf32, #tpu.memory_space<vmem>>, vector<16x128xf32>
    %6 = arith.truncf %5 : vector<16x128xf32> to vector<16x128xbf16>
    %7 = arith.extf %6 : vector<16x128xbf16> to vector<16x128xf32>
    %8 = arith.subf %5, %7 : vector<16x128xf32>
    %9 = arith.truncf %8 : vector<16x128xf32> to vector<16x128xbf16>
    %c0_4 = arith.constant 0 : index
    %c0_5 = arith.constant 0 : index
    %10 = vector.load %arg8[%c0_4, %c0_5] : memref<16x128xf32, #tpu.memory_space<vmem>>, vector<16x128xf32>
    %cst = arith.constant dense<0.000000e+00> : vector<16x128xf32>
    %11 = tpu.matmul %6, %4, %cst {dimension_numbers = #tpu.dot_dimension_numbers<[1], [0], [0], [1], [0, 0, 1, 1], [], []>} : vector<16x128xbf16>, vector<128x128xbf16>, vector<16x128xf32> -> vector<16x128xf32>
    %cst_6 = arith.constant dense<0.000000e+00> : vector<16x128xf32>
    %12 = tpu.matmul %9, %4, %cst_6 {dimension_numbers = #tpu.dot_dimension_numbers<[1], [0], [0], [1], [0, 0, 1, 1], [], []>} : vector<16x128xbf16>, vector<128x128xbf16>, vector<16x128xf32> -> vector<16x128xf32>
    %13 = arith.addf %11, %12 : vector<16x128xf32>
    %14 = arith.addf %10, %13 : vector<16x128xf32>
    %c0_7 = arith.constant 0 : index
    %c0_8 = arith.constant 0 : index
    %15 = vector.load %arg8[%c0_7, %c0_8] : memref<16x128xf32, #tpu.memory_space<vmem>>, vector<16x128xf32>
    tpu.vector_store %arg8[%c0_7, %c0_8], %14 {strides = array<i32>} : memref<16x128xf32, #tpu.memory_space<vmem>>, vector<16x128xf32>,
    %c0_i32_9 = arith.constant 0 : i32
    %16 = arith.cmpi eq, %arg2, %c0_i32_9 : i32
    %17 = arith.extui %16 : i1 to i32
    %c0_i32_10 = arith.constant 0 : i32
    %18 = arith.cmpi ne, %17, %c0_i32_10 : i32
    scf.if %18 {
      %c0_11 = arith.constant 0 : index
      %c0_12 = arith.constant 0 : index
      %19 = vector.load %arg8[%c0_11, %c0_12] : memref<16x128xf32, #tpu.memory_space<vmem>>, vector<16x128xf32>
      %c0_13 = arith.constant 0 : index
      %c0_14 = arith.constant 0 : index
      %20 = vector.load %arg5[%c0_13, %c0_14] : memref<1x128xf32, #tpu.memory_space<vmem>>, vector<1x128xf32>
      %21 = vector.broadcast %20 : vector<1x128xf32> to vector<16x128xf32>
      %22 = arith.mulf %19, %21 : vector<16x128xf32>
      %c0_15 = arith.constant 0 : index
      %c0_16 = arith.constant 0 : index
      %23 = vector.load %arg6[%c0_15, %c0_16] : memref<1x128xf32, #tpu.memory_space<vmem>>, vector<1x128xf32>
      %24 = vector.broadcast %23 : vector<1x128xf32> to vector<16x128xf32>
      %25 = arith.addf %22, %24 : vector<16x128xf32>
      %c0_17 = arith.constant 0 : index
      %c0_18 = arith.constant 0 : index
      %26 = vector.load %arg7[%c0_17, %c0_18] : memref<16x128xf32, #tpu.memory_space<vmem>>, vector<16x128xf32>
      tpu.vector_store %arg7[%c0_17, %c0_18], %25 {strides = array<i32>} : memref<16x128xf32, #tpu.memory_space<vmem>>, vector<16x128xf32>,
    } else {
    }
    return
  }
  func.func @transform_0(%arg0: i32, %arg1: i32, %arg2: i32) -> (i32, i32) {
    %c0_i32 = arith.constant 0 : i32
    return %arg0, %arg2 : i32, i32
  }
  func.func @transform_1(%arg0: i32, %arg1: i32, %arg2: i32) -> (i32, i32) {
    %c0_i32 = arith.constant 0 : i32
    return %arg2, %arg1 : i32, i32
  }
  func.func @transform_2(%arg0: i32, %arg1: i32, %arg2: i32) -> (i32, i32) {
    %c0_i32 = arith.constant 0 : i32
    %c0_i32_0 = arith.constant 0 : i32
    return %c0_i32, %arg1 : i32, i32
  }
  func.func @transform_3(%arg0: i32, %arg1: i32, %arg2: i32) -> (i32, i32) {
    %c0_i32 = arith.constant 0 : i32
    %c0_i32_0 = arith.constant 0 : i32
    return %c0_i32, %arg1 : i32, i32
  }
  func.func @transform_4(%arg0: i32, %arg1: i32, %arg2: i32) -> (i32, i32) {
    %c0_i32 = arith.constant 0 : i32
    return %arg0, %arg1 : i32, i32
  }
}

</mosaic_0001>

<bundles_post_ra>
// kernel: w8a16_linear.1
= control target key start
LH: loop header
LB: loop body
LE: loop exit
PB: predicated region body
PF: predicated region fallthrough
CT: control target
= control target key end

     0   :  { %v225_v0 = vmov 0.0   ;;  %vm226_vm0 = vmmov 0   ;;  %s282_s1 = inlined_call_operand.vmem [shape: s8[128,128], index: 1, kind: input, shape index: {}]   ;;  %s283_s0 = inlined_call_operand.vmem [shape: f32[16,128], index: 0, kind: input, shape index: {}]   ;;  %s284_s2 = inlined_call_operand.vmem [shape: f32[1,128], index: 2, kind: input, shape index: {}]   ;;  %s285_s3 = inlined_call_operand.vmem [shape: f32[1,128], index: 3, kind: input, shape index: {}]   ;;  %s286_s4 = inlined_call_operand.vmem [shape: f32[16,128], index: 4, kind: output, shape index: {}]  }
   0x1   :  { %181 = vmatprep.subr.bf16.mxu1 %v225_v0  ;;  %201 = vmatprep.subr.bf16.mxu0 %v225_v0  ;;  %v24_v1 = vld [vmem:[%s282_s1] sm:$0xff]  ;;  %v25_v4 = vld [vmem:[%s282_s1 + $0x8] sm:$0xff]  ;;  %v26_v7 = vld [vmem:[%s282_s1 + $0x10] sm:$0xff] }
   0x2   :  { %v28_v2 = vunpack.c.l.s8.bf16 %v24_v1  ;;  %197 = vmatprep.mubr.msk.bf16.mxu1 %vm226_vm0, %v225_v0  ;;  %217 = vmatprep.mubr.msk.bf16.mxu0 %vm226_vm0, %v225_v0  ;;  %v29_v3 = vunpack.c.h.s8.bf16 %v24_v1  ;;  %v30_v5 = vunpack.c.l.s8.bf16 %v25_v4  ;;  %v31_v6 = vunpack.c.h.s8.bf16 %v25_v4  ;;  %v36_v9 = vld [vmem:[%s283_s0] sm:$0xff]  ;;  %v37_v10 = vld [vmem:[%s283_s0 + $0x8] sm:$0xff]  ;;  %v27_v13 = vld [vmem:[%s282_s1 + $0x18] sm:$0xff] }
   0x3   :  { %v32_v8 = vunpack.c.l.s8.bf16 %v26_v7  ;;  %v38_v11 = vpack.c.bf16 %v37_v10, %v36_v9  ;;  %v33_v12 = vunpack.c.h.s8.bf16 %v26_v7  ;;  %v34_v16 = vunpack.c.l.s8.bf16 %v27_v13  ;;  %v161_v23 = vld [vmem:[%s284_s2] ss:$0 sm:$0xff] }
   0x4   :  { %182 = vmatpush3.bf16.msra.mxu1 %v28_v2  ;;  %202 = vmatpush3.bf16.msra.mxu0 %v28_v2  ;;  %v35_v19 = vunpack.c.h.s8.bf16 %v27_v13  ;;  %v162_v27 = vld [vmem:[%s285_s3] ss:$0 sm:$0xff] }
   0x5   :  { %183 = vmatprep.subr.bf16.mxu1 %v225_v0  ;;  %203 = vmatprep.subr.bf16.mxu0 %v225_v0  ;;  %v39_v14 = vunpack.c.l.bf16 %v38_v11  ;;  %v40_v15 = vunpack.c.h.bf16 %v38_v11 }
   0x7   :  { %v41_v17 = vsub.f32 %v36_v9, %v39_v14  ;;  %v42_v18 = vsub.f32 %v37_v10, %v40_v15 }
   0x8   :  { %184 = vmatpush3.bf16.msra.mxu1 %v29_v3  ;;  %204 = vmatpush3.bf16.msra.mxu0 %v29_v3 }
   0x9   :  { %185 = vmatprep.subr.bf16.mxu1 %v225_v0  ;;  %205 = vmatprep.subr.bf16.mxu0 %v225_v0  ;;  %v43_v20 = vpack.c.bf16 %v42_v18, %v41_v17 }
   0xc   :  { %186 = vmatpush3.bf16.msra.mxu1 %v30_v5  ;;  %206 = vmatpush3.bf16.msra.mxu0 %v30_v5 }
   0xd   :  { %187 = vmatprep.subr.bf16.mxu1 %v225_v0  ;;  %207 = vmatprep.subr.bf16.mxu0 %v225_v0 }
  0x10   :  { %188 = vmatpush3.bf16.msra.mxu1 %v31_v6  ;;  %208 = vmatpush3.bf16.msra.mxu0 %v31_v6 }
  0x11   :  { %189 = vmatprep.subr.bf16.mxu1 %v225_v0  ;;  %209 = vmatprep.subr.bf16.mxu0 %v225_v0 }
  0x14   :  { %190 = vmatpush3.bf16.msra.mxu1 %v32_v8  ;;  %210 = vmatpush3.bf16.msra.mxu0 %v32_v8 }
  0x15   :  { %191 = vmatprep.subr.bf16.mxu1 %v225_v0  ;;  %211 = vmatprep.subr.bf16.mxu0 %v225_v0 }
  0x18   :  { %192 = vmatpush3.bf16.msra.mxu1 %v33_v12  ;;  %212 = vmatpush3.bf16.msra.mxu0 %v33_v12 }
  0x19   :  { %193 = vmatprep.subr.bf16.mxu1 %v225_v0  ;;  %213 = vmatprep.subr.bf16.mxu0 %v225_v0 }
  0x1c   :  { %194 = vmatpush3.bf16.msra.mxu1 %v34_v16  ;;  %214 = vmatpush3.bf16.msra.mxu0 %v34_v16 }
  0x1d   :  { %195 = vmatprep.subr.bf16.mxu1 %v225_v0  ;;  %215 = vmatprep.subr.bf16.mxu0 %v225_v0 }
  0x20   :  { %196 = vmatpush3.bf16.msra.mxu1 %v35_v19  ;;  %216 = vmatpush3.bf16.msra.mxu0 %v35_v19 }
  0x23   :  { %198 = vmatmul.mubr.bf16.vlgmr.msra.gmra.mrb[0].mxu1 %v43_v20  ;;  %218 = vmatmul.mubr.bf16.vlgmr.msra.gmra.mrb[0].mxu0 %v38_v11 }
  0xf6   :  { %v80_v21 = vpop.f32.mrb[0].mxu1  ;;  %v121_v22 = vpop.f32.mrb[0].mxu0 }
  0xf7   :  { %v122_v24 = vadd.f32 %v121_v22, %v80_v21  ;;  %v199_v25 = vpop.f32.mrb[1].mxu1  ;;  %v219_v26 = vpop.f32.mrb[1].mxu0 }
  0xf8   :  { %v83_v28 = vpop.f32.mrb[2].mxu1  ;;  %v124_v29 = vpop.f32.mrb[2].mxu0 }
  0xf9   :  { %v144_v30 = vmul.f32 %v161_v23, %v122_v24  ;;  %v125_v31 = vadd.f32 %v124_v29, %v83_v28  ;;  %v200_v32 = vpop.f32.mrb[3].mxu1  ;;  %v220_v33 = vpop.f32.mrb[3].mxu0 }
  0xfb   :  { %v153_v34 = vadd.f32 %v162_v27, %v144_v30  ;;  %v145_v35 = vmul.f32 %v161_v23, %v125_v31 }
  0xfd   :  { %155 = vst [vmem:[%s286_s4] sm:$0xff] %v153_v34  ;;  %v154_v36 = vadd.f32 %v162_v27, %v145_v35 }
  0xff   :  { %156 = vst [vmem:[%s286_s4 + $0x8] sm:$0xff] %v154_v36 }

</bundles_post_ra>
